<compile_context>
chip_gen: v5e
topology: v5e:2x2
jax: 0.10.0
libtpu: 0.0.40
codegen_flags: <defaults>
</compile_context>

<pallas_src>
import numpy as np
import jax
import jax.numpy as jnp
from jax.experimental import pallas as pl
from jax.experimental.pallas import tpu as pltpu


def _softmax_over_classes(logit_t):
    """Softmax over axis 0 of a (cls, T) tile (classes on sublanes)."""
    m = jnp.max(logit_t, axis=0, keepdims=True)
    e = jnp.exp(logit_t - m)
    return e / jnp.sum(e, axis=0, keepdims=True)


# --------------------------------------------------------------------------
# Kernel 1: per-image reduction over HW tiles -> graph nodes, then GCN x3.
# --------------------------------------------------------------------------
def gba_reduce_kernel(x_ref, pre_fea_t_ref, w_fea_t_ref, adj_ref,
                      w1_ref, w2_ref, w3_ref, w_out_t_ref,
                      logit_ref, gwt_ref, graph_acc):
    t = pl.program_id(1)

    x = x_ref[0]                                   # (C, T): pixels on lanes
    cdt = x.dtype

    # logits^T = pre_fea^T @ x -> (cls, T); lane-dense output tile.
    logit_t = jnp.dot(pre_fea_t_ref[...], x, preferred_element_type=jnp.float32)
    # node features^T = W_fea^T @ x -> (hid, T)
    wnode_t = jnp.dot(w_fea_t_ref[...], x, preferred_element_type=jnp.float32)

    logit_ref[0] = logit_t                         # f32, lane-dense store

    # assignment: softmax over classes per pixel (computed once, reused below)
    assign_t = _softmax_over_classes(logit_t)      # (cls, T), f32

    @pl.when(t == 0)
    def _init():
        graph_acc[...] = jnp.zeros_like(graph_acc)

    # partial graph: contract over the pixel axis (HW is the MXU K axis)
    graph_acc[...] += jax.lax.dot_general(
        assign_t.astype(cdt), wnode_t.astype(cdt),
        dimension_numbers=(((1,), (1,)), ((), ())),
        preferred_element_type=jnp.float32)        # (cls, hid)

    # GCN layers run exactly once per image, on the last HW tile.
    @pl.when(t == pl.num_programs(1) - 1)
    def _finalize():
        adj = adj_ref[...]                         # (cls, cls), f32
        graph = graph_acc[...]                     # (cls, hid), f32
        for w_ref in (w1_ref, w2_ref, w3_ref):     # GraphConvolution, relu=True
            support = jnp.dot(graph.astype(cdt), w_ref[...],
                              preferred_element_type=jnp.float32)
            graph = jnp.maximum(
                jnp.dot(adj, support, preferred_element_type=jnp.float32), 0.0)
        # fold the output projection: gw^T = W_out^T @ graph^T -> (out_c, cls)
        gwt_ref[0] = jax.lax.dot_general(
            w_out_t_ref[...], graph.astype(cdt),
            dimension_numbers=(((1,), (1,)), ((), ())),
            preferred_element_type=jnp.float32)


# --------------------------------------------------------------------------
# Kernel 2: per-tile reprojection to pixel space.
# TODO(synk): exact gcn.My_Graph_to_Featuremaps source unavailable; assumed
#             out = relu(softmax(fea_logit) @ graph @ W_out) (no concat/BN).
# --------------------------------------------------------------------------
def gba_project_kernel(logit_ref, gwt_ref, out_ref):
    logit_t = logit_ref[0]                          # (cls, T), f32
    assign_t = _softmax_over_classes(logit_t)       # (cls, T)
    gwt = gwt_ref[0]                                # (out_c, cls)
    out_t = jnp.dot(gwt, assign_t, preferred_element_type=jnp.float32)  # (out_c, T)
    out_ref[0] = jnp.maximum(out_t, 0.0)            # lane-dense store


def _pick_hw_tile(hw, max_tile):
    """Largest multiple of 128 that divides hw (capped at max_tile); else full extent."""
    if hw % 128 != 0:
        return hw
    best = 128
    t = 128
    while t <= min(hw, max_tile):
        if hw % t == 0:
            best = t
        t += 128
    return best


def gba_forward(x_nchw, params, *, max_hw_tile=2048, compute_dtype=jnp.float32):
    N, C, H, W = x_nchw.shape
    HW = H * W
    cls = params["adj"].shape[0]
    hid = params["w_fea"].shape[1]
    out_c = params["w_out"].shape[1]

    tile = _pick_hw_tile(HW, max_hw_tile)
    num_tiles = HW // tile

    # Free view of NCHW (no transpose): pixels land on the fast/lane axis.
    x = x_nchw.reshape(N, C, HW).astype(compute_dtype)
    # Tiny weights pre-transposed host/XLA-side so all large in-kernel matmuls
    # are in natural MXU orientation (no transposed-LHS on big operands).
    pre_fea_t = params["pre_fea"].T.astype(compute_dtype)   # (cls, C)
    w_fea_t = params["w_fea"].T.astype(compute_dtype)       # (hid, C)
    w_out_t = params["w_out"].T.astype(compute_dtype)       # (out_c, hid)
    w1 = params["w1"].astype(compute_dtype)
    w2 = params["w2"].astype(compute_dtype)
    w3 = params["w3"].astype(compute_dtype)
    adj = params["adj"].astype(jnp.float32)

    # ---------------- pass 1: feature->graph reduction + GCN ----------------
    logit_flat, gwt = pl.pallas_call(
        gba_reduce_kernel,
        out_shape=(jax.ShapeDtypeStruct((N, cls, HW), jnp.float32),
                   jax.ShapeDtypeStruct((N, out_c, cls), jnp.float32)),
        grid=(N, num_tiles),
        in_specs=[
            pl.BlockSpec((1, C, tile), lambda n, t: (n, 0, t)),
            pl.BlockSpec((cls, C), lambda n, t: (0, 0)),
            pl.BlockSpec((hid, C), lambda n, t: (0, 0)),
            pl.BlockSpec((cls, cls), lambda n, t: (0, 0)),
            pl.BlockSpec((hid, hid), lambda n, t: (0, 0)),
            pl.BlockSpec((hid, hid), lambda n, t: (0, 0)),
            pl.BlockSpec((hid, hid), lambda n, t: (0, 0)),
            pl.BlockSpec((out_c, hid), lambda n, t: (0, 0)),
        ],
        out_specs=(pl.BlockSpec((1, cls, tile), lambda n, t: (n, 0, t)),
                   pl.BlockSpec((1, out_c, cls), lambda n, t: (n, 0, 0))),
        scratch_shapes=[pltpu.VMEM((cls, hid), jnp.float32)],
        compiler_params=pltpu.CompilerParams(
            dimension_semantics=("parallel", "arbitrary")),
    )(x, pre_fea_t, w_fea_t, adj, w1, w2, w3, w_out_t)

    # ---------------- pass 2: graph->feature projection ----------------
    out_flat = pl.pallas_call(
        gba_project_kernel,
        out_shape=jax.ShapeDtypeStruct((N, out_c, HW), jnp.float32),
        grid=(N, num_tiles),
        in_specs=[
            pl.BlockSpec((1, cls, tile), lambda n, t: (n, 0, t)),
            pl.BlockSpec((1, out_c, cls), lambda n, t: (n, 0, 0)),
        ],
        out_specs=pl.BlockSpec((1, out_c, tile), lambda n, t: (n, 0, t)),
        compiler_params=pltpu.CompilerParams(
            dimension_semantics=("parallel", "parallel")),
    )(logit_flat, gwt)

    # Free views back to PyTorch NCHW (no transposes).
    out_nchw = out_flat.reshape(N, out_c, H, W)
    logit_nchw = logit_flat.reshape(N, cls, H, W)
    return out_nchw, logit_nchw


def make_params(input_num, output_channels, hidden_layer, class_num, key):
    # Deterministic synthetic parameter init (mirrors the nn.Parameter shapes).
    k = jax.random.split(key, 6)
    scale = 0.25
    params = {
        "pre_fea": scale * jax.random.normal(k[0], (input_num, class_num), jnp.float32),
        "w_fea":   scale * jax.random.normal(k[1], (input_num, hidden_layer), jnp.float32),
        "w1":      scale * jax.random.normal(k[2], (hidden_layer, hidden_layer), jnp.float32),
        "w2":      scale * jax.random.normal(k[3], (hidden_layer, hidden_layer), jnp.float32),
        "w3":      scale * jax.random.normal(k[4], (hidden_layer, hidden_layer), jnp.float32),
        "w_out":   scale * jax.random.normal(k[5], (hidden_layer, output_channels), jnp.float32),
    }
    # tooth_graph: deterministic chain adjacency over class_num nodes, then
    # preprocess_adj: D^{-1/2} (A + I) D^{-1/2}
    A = np.zeros((class_num, class_num), dtype=np.float32)
    for i in range(class_num - 1):
        A[i, i + 1] = 1.0
        A[i + 1, i] = 1.0
    A_hat = A + np.eye(class_num, dtype=np.float32)
    d = A_hat.sum(axis=1)
    d_inv_sqrt = np.where(d > 0, d ** -0.5, 0.0)
    D = np.diag(d_inv_sqrt)
    adj = D @ A_hat @ D
    params["adj"] = jnp.asarray(adj, jnp.float32)
    return params


def _reference_forward_np(x_nchw, params):
    """float64 numpy reference of the same forward math (pixel-major)."""
    x = np.asarray(x_nchw, np.float64)
    p = {k: np.asarray(v, np.float64) for k, v in params.items()}
    N, C, H, W = x.shape
    HW = H * W
    xp = x.reshape(N, C, HW).transpose(0, 2, 1)                  # (N, HW, C)
    logit = xp @ p["pre_fea"]                                    # (N, HW, cls)
    wnode = xp @ p["w_fea"]                                      # (N, HW, hid)
    e = np.exp(logit - logit.max(axis=-1, keepdims=True))
    assign = e / e.sum(axis=-1, keepdims=True)
    graph = np.einsum("npk,nph->nkh", assign, wnode)             # (N, cls, hid)
    for name in ("w1", "w2", "w3"):
        support = graph @ p[name]
        graph = np.maximum(np.einsum("kj,njh->nkh", p["adj"], support), 0.0)
    gw = graph @ p["w_out"]                                      # (N, cls, out_c)
    out = np.maximum(assign @ gw, 0.0)                           # (N, HW, out_c)
    out_nchw = out.transpose(0, 2, 1).reshape(N, -1, H, W)
    logit_nchw = logit.transpose(0, 2, 1).reshape(N, -1, H, W)
    return out_nchw, logit_nchw


if __name__ == "__main__":
    N, C, H, W = 2, 4, 16, 16
    hidden_layer = 32
    output_channels = 8
    class_num = 10

    key = jax.random.PRNGKey(0)
    kx, kp = jax.random.split(key)
    x = jax.random.normal(kx, (N, C, H, W), jnp.float32)
    params = make_params(C, output_channels, hidden_layer, class_num, kp)

    fwd = jax.jit(gba_forward, static_argnames=("max_hw_tile", "compute_dtype"))

    out_fea, fea_logit = jax.block_until_ready(fwd(x, params))

    assert out_fea.shape == (N, output_channels, H, W)
    assert fea_logit.shape == (N, class_num, H, W)
    assert bool(jnp.all(jnp.isfinite(out_fea))) and bool(jnp.all(jnp.isfinite(fea_logit)))

    # Numerical check against a float64 numpy reference.
    ref_out, ref_logit = _reference_forward_np(x, params)
    np.testing.assert_allclose(np.asarray(fea_logit, np.float64), ref_logit,
                               rtol=5e-2, atol=1e-2)
    np.testing.assert_allclose(np.asarray(out_fea, np.float64), ref_out,
                               rtol=5e-2, atol=1e-2)

    # Exercise the multi-tile path (HW split into 2 tiles -> accumulator + pl.when).
    out2, logit2 = jax.block_until_ready(fwd(x, params, max_hw_tile=128))
    np.testing.assert_allclose(np.asarray(logit2, np.float64), ref_logit,
                               rtol=5e-2, atol=1e-2)
    np.testing.assert_allclose(np.asarray(out2, np.float64), ref_out,
                               rtol=5e-2, atol=1e-2)

    print("KERNEL_OK")
</pallas_src>

<mosaic_0001>
module attributes {stable_mosaic.version = 11 : i64} {
  func.func @gba_project_kernel(%arg0: i32, %arg1: i32, %arg2: memref<1x10x256xf32, #tpu.memory_space<vmem>>, %arg3: memref<1x8x10xf32, #tpu.memory_space<vmem>>, %arg4: memref<1x8x256xf32, #tpu.memory_space<vmem>>) attributes {dimension_semantics = [#tpu.dimension_semantics<parallel>, #tpu.dimension_semantics<parallel>], iteration_bounds = array<i64: 2, 1>, scalar_prefetch = 0 : i64, scratch_operands = 0 : i64, tpu.core_type = #tpu.core_type<tc>, window_params = [{transform_indices = @transform_0, window_bounds = array<i64: 1, 10, 256>}, {transform_indices = @transform_1, window_bounds = array<i64: 1, 8, 10>}, {transform_indices = @transform_2, window_bounds = array<i64: 1, 8, 256>}]} {
    %c0 = arith.constant 0 : index
    %c0_0 = arith.constant 0 : index
    %c0_1 = arith.constant 0 : index
    %0 = vector.load %arg2[%c0, %c0_0, %c0_1] : memref<1x10x256xf32, #tpu.memory_space<vmem>>, vector<1x10x256xf32>
    %1 = vector.shape_cast %0 : vector<1x10x256xf32> to vector<10x256xf32>
    %cst = arith.constant dense<0xFF800000> : vector<256xf32>
    %2 = vector.multi_reduction <maximumf>, %1, %cst [0] : vector<10x256xf32> to vector<256xf32>
    %3 = vector.shape_cast %2 : vector<256xf32> to vector<1x256xf32>
    %4 = vector.broadcast %3 : vector<1x256xf32> to vector<10x256xf32>
    %5 = arith.subf %1, %4 : vector<10x256xf32>
    %6 = math.exp %5 : vector<10x256xf32>
    %cst_2 = arith.constant dense<0.000000e+00> : vector<256xf32>
    %7 = vector.multi_reduction <add>, %6, %cst_2 [0] : vector<10x256xf32> to vector<256xf32>
    %8 = vector.shape_cast %7 : vector<256xf32> to vector<1x256xf32>
    %9 = vector.broadcast %8 : vector<1x256xf32> to vector<10x256xf32>
    %10 = arith.divf %6, %9 : vector<10x256xf32>
    %c0_3 = arith.constant 0 : index
    %c0_4 = arith.constant 0 : index
    %c0_5 = arith.constant 0 : index
    %11 = vector.load %arg3[%c0_3, %c0_4, %c0_5] : memref<1x8x10xf32, #tpu.memory_space<vmem>>, vector<1x8x10xf32>
    %12 = vector.shape_cast %11 : vector<1x8x10xf32> to vector<8x10xf32>
    %cst_6 = arith.constant dense<0.000000e+00> : vector<8x256xf32>
    %13 = tpu.matmul %12, %10, %cst_6 {dimension_numbers = #tpu.dot_dimension_numbers<[1], [0], [0], [1], [0, 0, 1, 1], [], []>} : vector<8x10xf32>, vector<10x256xf32>, vector<8x256xf32> -> vector<8x256xf32>
    %cst_7 = arith.constant 0.000000e+00 : f32
    %14 = vector.broadcast %cst_7 : f32 to vector<8x256xf32>
    %15 = arith.maximumf %13, %14 : vector<8x256xf32>
    %c0_8 = arith.constant 0 : index
    %c0_9 = arith.constant 0 : index
    %c0_10 = arith.constant 0 : index
    %16 = vector.load %arg4[%c0_8, %c0_9, %c0_10] : memref<1x8x256xf32, #tpu.memory_space<vmem>>, vector<1x8x256xf32>
    %17 = vector.shape_cast %16 : vector<1x8x256xf32> to vector<8x256xf32>
    %18 = vector.shape_cast %15 : vector<8x256xf32> to vector<1x8x256xf32>
    tpu.vector_store %arg4[%c0_8, %c0_9, %c0_10], %18 {strides = array<i32>} : memref<1x8x256xf32, #tpu.memory_space<vmem>>, vector<1x8x256xf32>,
    return
  }
  func.func @transform_0(%arg0: i32, %arg1: i32) -> (i32, i32, i32) {
    %c0_i32 = arith.constant 0 : i32
    %c0_i32_0 = arith.constant 0 : i32
    return %arg0, %c0_i32, %arg1 : i32, i32, i32
  }
  func.func @transform_1(%arg0: i32, %arg1: i32) -> (i32, i32, i32) {
    %c0_i32 = arith.constant 0 : i32
    %c0_i32_0 = arith.constant 0 : i32
    %c0_i32_1 = arith.constant 0 : i32
    return %arg0, %c0_i32, %c0_i32_0 : i32, i32, i32
  }
  func.func @transform_2(%arg0: i32, %arg1: i32) -> (i32, i32, i32) {
    %c0_i32 = arith.constant 0 : i32
    %c0_i32_0 = arith.constant 0 : i32
    return %arg0, %c0_i32, %arg1 : i32, i32, i32
  }
}

module attributes {stable_mosaic.version = 11 : i64} {
  func.func @gba_reduce_kernel(%arg0: i32, %arg1: i32, %arg2: memref<1x4x256xf32, #tpu.memory_space<vmem>>, %arg3: memref<10x4xf32, #tpu.memory_space<vmem>>, %arg4: memref<32x4xf32, #tpu.memory_space<vmem>>, %arg5: memref<10x10xf32, #tpu.memory_space<vmem>>, %arg6: memref<32x32xf32, #tpu.memory_space<vmem>>, %arg7: memref<32x32xf32, #tpu.memory_space<vmem>>, %arg8: memref<32x32xf32, #tpu.memory_space<vmem>>, %arg9: memref<8x32xf32, #tpu.memory_space<vmem>>, %arg10: memref<1x10x256xf32, #tpu.memory_space<vmem>>, %arg11: memref<1x8x10xf32, #tpu.memory_space<vmem>>, %arg12: memref<10x32xf32, #tpu.memory_space<vmem>>) attributes {dimension_semantics = [#tpu.dimension_semantics<parallel>, #tpu.dimension_semantics<arbitrary>], iteration_bounds = array<i64: 2, 1>, scalar_prefetch = 0 : i64, scratch_operands = 1 : i64, tpu.core_type = #tpu.core_type<tc>, window_params = [{transform_indices = @transform_0, window_bounds = array<i64: 1, 4, 256>}, {pipeline_mode = #tpu.pipeline_mode<synchronous>, transform_indices = @transform_1, window_bounds = array<i64: 10, 4>}, {pipeline_mode = #tpu.pipeline_mode<synchronous>, transform_indices = @transform_2, window_bounds = array<i64: 32, 4>}, {pipeline_mode = #tpu.pipeline_mode<synchronous>, transform_indices = @transform_3, window_bounds = array<i64: 10, 10>}, {pipeline_mode = #tpu.pipeline_mode<synchronous>, transform_indices = @transform_4, window_bounds = array<i64: 32, 32>}, {pipeline_mode = #tpu.pipeline_mode<synchronous>, transform_indices = @transform_5, window_bounds = array<i64: 32, 32>}, {pipeline_mode = #tpu.pipeline_mode<synchronous>, transform_indices = @transform_6, window_bounds = array<i64: 32, 32>}, {pipeline_mode = #tpu.pipeline_mode<synchronous>, transform_indices = @transform_7, window_bounds = array<i64: 8, 32>}, {transform_indices = @transform_8, window_bounds = array<i64: 1, 10, 256>}, {transform_indices = @transform_9, window_bounds = array<i64: 1, 8, 10>}]} {
    %c0 = arith.constant 0 : index
    %c0_0 = arith.constant 0 : index
    %c0_1 = arith.constant 0 : index
    %0 = vector.load %arg2[%c0, %c0_0, %c0_1] : memref<1x4x256xf32, #tpu.memory_space<vmem>>, vector<1x4x256xf32>
    %1 = vector.shape_cast %0 : vector<1x4x256xf32> to vector<4x256xf32>
    %c0_2 = arith.constant 0 : index
    %c0_3 = arith.constant 0 : index
    %2 = vector.load %arg3[%c0_2, %c0_3] : memref<10x4xf32, #tpu.memory_space<vmem>>, vector<10x4xf32>
    %cst = arith.constant dense<0.000000e+00> : vector<10x256xf32>
    %3 = tpu.matmul %2, %1, %cst {dimension_numbers = #tpu.dot_dimension_numbers<[1], [0], [0], [1], [0, 0, 1, 1], [], []>} : vector<10x4xf32>, vector<4x256xf32>, vector<10x256xf32> -> vector<10x256xf32>
    %c0_4 = arith.constant 0 : index
    %c0_5 = arith.constant 0 : index
    %4 = vector.load %arg4[%c0_4, %c0_5] : memref<32x4xf32, #tpu.memory_space<vmem>>, vector<32x4xf32>
    %cst_6 = arith.constant dense<0.000000e+00> : vector<32x256xf32>
    %5 = tpu.matmul %4, %1, %cst_6 {dimension_numbers = #tpu.dot_dimension_numbers<[1], [0], [0], [1], [0, 0, 1, 1], [], []>} : vector<32x4xf32>, vector<4x256xf32>, vector<32x256xf32> -> vector<32x256xf32>
    %c0_7 = arith.constant 0 : index
    %c0_8 = arith.constant 0 : index
    %c0_9 = arith.constant 0 : index
    %6 = vector.load %arg10[%c0_7, %c0_8, %c0_9] : memref<1x10x256xf32, #tpu.memory_space<vmem>>, vector<1x10x256xf32>
    %7 = vector.shape_cast %6 : vector<1x10x256xf32> to vector<10x256xf32>
    %8 = vector.shape_cast %3 : vector<10x256xf32> to vector<1x10x256xf32>
    tpu.vector_store %arg10[%c0_7, %c0_8, %c0_9], %8 {strides = array<i32>} : memref<1x10x256xf32, #tpu.memory_space<vmem>>, vector<1x10x256xf32>,
    %cst_10 = arith.constant dense<0xFF800000> : vector<256xf32>
    %9 = vector.multi_reduction <maximumf>, %3, %cst_10 [0] : vector<10x256xf32> to vector<256xf32>
    %10 = vector.shape_cast %9 : vector<256xf32> to vector<1x256xf32>
    %11 = vector.broadcast %10 : vector<1x256xf32> to vector<10x256xf32>
    %12 = arith.subf %3, %11 : vector<10x256xf32>
    %13 = math.exp %12 : vector<10x256xf32>
    %cst_11 = arith.constant dense<0.000000e+00> : vector<256xf32>
    %14 = vector.multi_reduction <add>, %13, %cst_11 [0] : vector<10x256xf32> to vector<256xf32>
    %15 = vector.shape_cast %14 : vector<256xf32> to vector<1x256xf32>
    %16 = vector.broadcast %15 : vector<1x256xf32> to vector<10x256xf32>
    %17 = arith.divf %13, %16 : vector<10x256xf32>
    %c0_i32 = arith.constant 0 : i32
    %18 = arith.cmpi eq, %arg1, %c0_i32 : i32
    %19 = arith.extui %18 : i1 to i32
    %c0_i32_12 = arith.constant 0 : i32
    %20 = arith.cmpi ne, %19, %c0_i32_12 : i32
    scf.if %20 {
      %cst_20 = arith.constant 0.000000e+00 : f32
      %28 = vector.broadcast %cst_20 : f32 to vector<10x32xf32>
      %c0_21 = arith.constant 0 : index
      %c0_22 = arith.constant 0 : index
      %29 = vector.load %arg12[%c0_21, %c0_22] : memref<10x32xf32, #tpu.memory_space<vmem>>, vector<10x32xf32>
      tpu.vector_store %arg12[%c0_21, %c0_22], %28 {strides = array<i32>} : memref<10x32xf32, #tpu.memory_space<vmem>>, vector<10x32xf32>,
    } else {
    }
    %c0_13 = arith.constant 0 : index
    %c0_14 = arith.constant 0 : index
    %21 = vector.load %arg12[%c0_13, %c0_14] : memref<10x32xf32, #tpu.memory_space<vmem>>, vector<10x32xf32>
    %cst_15 = arith.constant dense<0.000000e+00> : vector<10x32xf32>
    %22 = tpu.matmul %17, %5, %cst_15 {dimension_numbers = #tpu.dot_dimension_numbers<[1], [1], [0], [0], [0, 0, 1, 0], [], []>} : vector<10x256xf32>, vector<32x256xf32>, vector<10x32xf32> -> vector<10x32xf32>
    %23 = arith.addf %21, %22 : vector<10x32xf32>
    %c0_16 = arith.constant 0 : index
    %c0_17 = arith.constant 0 : index
    %24 = vector.load %arg12[%c0_16, %c0_17] : memref<10x32xf32, #tpu.memory_space<vmem>>, vector<10x32xf32>
    tpu.vector_store %arg12[%c0_16, %c0_17], %23 {strides = array<i32>} : memref<10x32xf32, #tpu.memory_space<vmem>>, vector<10x32xf32>,
    %c0_i32_18 = arith.constant 0 : i32
    %25 = arith.cmpi eq, %arg1, %c0_i32_18 : i32
    %26 = arith.extui %25 : i1 to i32
    %c0_i32_19 = arith.constant 0 : i32
    %27 = arith.cmpi ne, %26, %c0_i32_19 : i32
    scf.if %27 {
      %c0_20 = arith.constant 0 : index
      %c0_21 = arith.constant 0 : index
      %28 = vector.load %arg5[%c0_20, %c0_21] : memref<10x10xf32, #tpu.memory_space<vmem>>, vector<10x10xf32>
      %c0_22 = arith.constant 0 : index
      %c0_23 = arith.constant 0 : index
      %29 = vector.load %arg12[%c0_22, %c0_23] : memref<10x32xf32, #tpu.memory_space<vmem>>, vector<10x32xf32>
      %c0_24 = arith.constant 0 : index
      %c0_25 = arith.constant 0 : index
      %30 = vector.load %arg6[%c0_24, %c0_25] : memref<32x32xf32, #tpu.memory_space<vmem>>, vector<32x32xf32>
      %cst_26 = arith.constant dense<0.000000e+00> : vector<10x32xf32>
      %31 = tpu.matmul %29, %30, %cst_26 {dimension_numbers = #tpu.dot_dimension_numbers<[1], [0], [0], [1], [0, 0, 1, 1], [], []>} : vector<10x32xf32>, vector<32x32xf32>, vector<10x32xf32> -> vector<10x32xf32>
      %cst_27 = arith.constant dense<0.000000e+00> : vector<10x32xf32>
      %32 = tpu.matmul %28, %31, %cst_27 {dimension_numbers = #tpu.dot_dimension_numbers<[1], [0], [0], [1], [0, 0, 1, 1], [], []>} : vector<10x10xf32>, vector<10x32xf32>, vector<10x32xf32> -> vector<10x32xf32>
      %cst_28 = arith.constant 0.000000e+00 : f32
      %33 = vector.broadcast %cst_28 : f32 to vector<10x32xf32>
      %34 = arith.maximumf %32, %33 : vector<10x32xf32>
      %c0_29 = arith.constant 0 : index
      %c0_30 = arith.constant 0 : index
      %35 = vector.load %arg7[%c0_29, %c0_30] : memref<32x32xf32, #tpu.memory_space<vmem>>, vector<32x32xf32>
      %cst_31 = arith.constant dense<0.000000e+00> : vector<10x32xf32>
      %36 = tpu.matmul %34, %35, %cst_31 {dimension_numbers = #tpu.dot_dimension_numbers<[1], [0], [0], [1], [0, 0, 1, 1], [], []>} : vector<10x32xf32>, vector<32x32xf32>, vector<10x32xf32> -> vector<10x32xf32>
      %cst_32 = arith.constant dense<0.000000e+00> : vector<10x32xf32>
      %37 = tpu.matmul %28, %36, %cst_32 {dimension_numbers = #tpu.dot_dimension_numbers<[1], [0], [0], [1], [0, 0, 1, 1], [], []>} : vector<10x10xf32>, vector<10x32xf32>, vector<10x32xf32> -> vector<10x32xf32>
      %cst_33 = arith.constant 0.000000e+00 : f32
      %38 = vector.broadcast %cst_33 : f32 to vector<10x32xf32>
      %39 = arith.maximumf %37, %38 : vector<10x32xf32>
      %c0_34 = arith.constant 0 : index
      %c0_35 = arith.constant 0 : index
      %40 = vector.load %arg8[%c0_34, %c0_35] : memref<32x32xf32, #tpu.memory_space<vmem>>, vector<32x32xf32>
      %cst_36 = arith.constant dense<0.000000e+00> : vector<10x32xf32>
      %41 = tpu.matmul %39, %40, %cst_36 {dimension_numbers = #tpu.dot_dimension_numbers<[1], [0], [0], [1], [0, 0, 1, 1], [], []>} : vector<10x32xf32>, vector<32x32xf32>, vector<10x32xf32> -> vector<10x32xf32>
      %cst_37 = arith.constant dense<0.000000e+00> : vector<10x32xf32>
      %42 = tpu.matmul %28, %41, %cst_37 {dimension_numbers = #tpu.dot_dimension_numbers<[1], [0], [0], [1], [0, 0, 1, 1], [], []>} : vector<10x10xf32>, vector<10x32xf32>, vector<10x32xf32> -> vector<10x32xf32>
      %cst_38 = arith.constant 0.000000e+00 : f32
      %43 = vector.broadcast %cst_38 : f32 to vector<10x32xf32>
      %44 = arith.maximumf %42, %43 : vector<10x32xf32>
      %c0_39 = arith.constant 0 : index
      %c0_40 = arith.constant 0 : index
      %45 = vector.load %arg9[%c0_39, %c0_40] : memref<8x32xf32, #tpu.memory_space<vmem>>, vector<8x32xf32>
      %cst_41 = arith.constant dense<0.000000e+00> : vector<8x10xf32>
      %46 = tpu.matmul %45, %44, %cst_41 {dimension_numbers = #tpu.dot_dimension_numbers<[1], [1], [0], [0], [0, 0, 1, 0], [], []>} : vector<8x32xf32>, vector<10x32xf32>, vector<8x10xf32> -> vector<8x10xf32>
      %c0_42 = arith.constant 0 : index
      %c0_43 = arith.constant 0 : index
      %c0_44 = arith.constant 0 : index
      %47 = vector.load %arg11[%c0_42, %c0_43, %c0_44] : memref<1x8x10xf32, #tpu.memory_space<vmem>>, vector<1x8x10xf32>
      %48 = vector.shape_cast %47 : vector<1x8x10xf32> to vector<8x10xf32>
      %49 = vector.shape_cast %46 : vector<8x10xf32> to vector<1x8x10xf32>
      tpu.vector_store %arg11[%c0_42, %c0_43, %c0_44], %49 {strides = array<i32>} : memref<1x8x10xf32, #tpu.memory_space<vmem>>, vector<1x8x10xf32>,
    } else {
    }
    return
  }
  func.func @transform_0(%arg0: i32, %arg1: i32) -> (i32, i32, i32) {
    %c0_i32 = arith.constant 0 : i32
    %c0_i32_0 = arith.constant 0 : i32
    return %arg0, %c0_i32, %arg1 : i32, i32, i32
  }
  func.func @transform_1(%arg0: i32, %arg1: i32) -> (i32, i32) {
    %c0_i32 = arith.constant 0 : i32
    %c0_i32_0 = arith.constant 0 : i32
    %c0_i32_1 = arith.constant 0 : i32
    return %c0_i32, %c0_i32_0 : i32, i32
  }
  func.func @transform_2(%arg0: i32, %arg1: i32) -> (i32, i32) {
    %c0_i32 = arith.constant 0 : i32
    %c0_i32_0 = arith.constant 0 : i32
    %c0_i32_1 = arith.constant 0 : i32
    return %c0_i32, %c0_i32_0 : i32, i32
  }
  func.func @transform_3(%arg0: i32, %arg1: i32) -> (i32, i32) {
    %c0_i32 = arith.constant 0 : i32
    %c0_i32_0 = arith.constant 0 : i32
    %c0_i32_1 = arith.constant 0 : i32
    return %c0_i32, %c0_i32_0 : i32, i32
  }
  func.func @transform_4(%arg0: i32, %arg1: i32) -> (i32, i32) {
    %c0_i32 = arith.constant 0 : i32
    %c0_i32_0 = arith.constant 0 : i32
    %c0_i32_1 = arith.constant 0 : i32
    return %c0_i32, %c0_i32_0 : i32, i32
  }
  func.func @transform_5(%arg0: i32, %arg1: i32) -> (i32, i32) {
    %c0_i32 = arith.constant 0 : i32
    %c0_i32_0 = arith.constant 0 : i32
    %c0_i32_1 = arith.constant 0 : i32
    return %c0_i32, %c0_i32_0 : i32, i32
  }
  func.func @transform_6(%arg0: i32, %arg1: i32) -> (i32, i32) {
    %c0_i32 = arith.constant 0 : i32
    %c0_i32_0 = arith.constant 0 : i32
    %c0_i32_1 = arith.constant 0 : i32
    return %c0_i32, %c0_i32_0 : i32, i32
  }
  func.func @transform_7(%arg0: i32, %arg1: i32) -> (i32, i32) {
    %c0_i32 = arith.constant 0 : i32
    %c0_i32_0 = arith.constant 0 : i32
    %c0_i32_1 = arith.constant 0 : i32
    return %c0_i32, %c0_i32_0 : i32, i32
  }
  func.func @transform_8(%arg0: i32, %arg1: i32) -> (i32, i32, i32) {
    %c0_i32 = arith.constant 0 : i32
    %c0_i32_0 = arith.constant 0 : i32
    return %arg0, %c0_i32, %arg1 : i32, i32, i32
  }
  func.func @transform_9(%arg0: i32, %arg1: i32) -> (i32, i32, i32) {
    %c0_i32 = arith.constant 0 : i32
    %c0_i32_0 = arith.constant 0 : i32
    %c0_i32_1 = arith.constant 0 : i32
    return %arg0, %c0_i32, %c0_i32_0 : i32, i32, i32
  }
}

</mosaic_0001>

<bundles_post_ra>
// kernel: gba_forward.3
= control target key start
LH: loop header
LB: loop body
LE: loop exit
PB: predicated region body
PF: predicated region fallthrough
CT: control target
= control target key end

     0   :  { %s528_s9 = smov 0   ;;  %s530_s10 = smov 0   ;;  %s575_s0 = inlined_call_operand.vmem [shape: f32[2,10,256], index: 0, kind: input, shape index: {}]   ;;  %s576_s1 = inlined_call_operand.vmem [shape: f32[2,8,10], index: 1, kind: input, shape index: {}]   ;;  %s577_s2 = inlined_call_operand.vmem [shape: f32[2,8,256], index: 2, kind: output, shape index: {}]  }
   0x1   :  { %s532_s11 = smov 0  }
   0x2 LB: > { %s24_s12 = sadd.s32 1, %s507_s10  ;;  %p439_p0 = scmp.ge.s32.totalorder %s511_s11, 1  ;;  %s511_s11 = sphi %s532_s11, %s12_s11   ;;  %s507_s10 = sphi %s530_s10, %s579_s10   ;;  %s503_s9 = sphi %s528_s9, %s578_s9  }
   0x3   : > { %p26_p1 = scmp.ge.s32.totalorder %s24_s12, 2  ;;  %p142_p2 = scmp.lt.s32.totalorder %s511_s11, 3 }
   0x5   : > { %s581_s12 = smov (%p26_p1, %s24_s12), 0  ;;  %p143_p3 = pnand %p439_p0, %p142_p2 }
   0x6   : > { %p177_p4 = scmp.lt.s32.totalorder (!%p143_p3), %s503_s9, 1 }
   0x7   : > { %146 = sbr.rel (%p143_p3) target bundleno = 211 (0xd3), region = 28 }
   0xc   : > { %s583_s9 = smov (!%p177_p4, %s503_s9), 1  ;;  %vm204_vm0 = vcmask 1041408   ;;  %vm282_vm9 = vcmask 80896  }
   0xd   : > { %s451_s13 = sshll.u32 %s583_s9, 5  ;;  %s442_s17 = sshll.u32 %s583_s9, 3 }
   0xe   : > { %s184_s16 = scalar_lea.vmem %s575_s0, %s451_s13  ;;  %s189_s20 = scalar_lea.vmem %s576_s1, %s442_s17 }
   0xf   : > { %v200_v0 = vld [vmem:[%s184_s16] sm:$0xff]  ;;  %v202_v1 = vld [vmem:[%s184_s16 + $0x10] sm:$0x3]  ;;  %v201_v2 = vld [vmem:[%s184_s16 + $0x8] sm:$0xff]  ;;  %s452_s21 = sshll.u32 %s583_s9, 4 }
  0x10   : > { %v205_v3 = vsel %vm204_vm0, %v202_v1, -inf  ;;  %v203_v4 = vld [vmem:[%s184_s16 + $0x18] sm:$0x3]  ;;  %s198_s24 = scalar_lea.vmem %s577_s2, %s452_s21 }
  0x11   : > { %v206_v5 = vmax.f32 %v200_v0, %v205_v3  ;;  %v213_v6 = vsel %vm204_vm0, %v203_v4, -inf }
  0x12   : > { %v214_v7 = vmax.f32 %v201_v2, %v213_v6  ;;  %v281_v6 = vld [vmem:[%s189_s20] sm:$0xff] }
  0x13   : > { %v207_v8 = vrot.slane %v206_v5, 4 }
  0x14   : > { %v215_v9 = vrot.slane %v214_v7, 4 }
  0x15   : > { %v208_v10 = vmax.f32 %v206_v5, %v207_v8 }
  0x16   : > { %v216_v11 = vmax.f32 %v214_v7, %v215_v9 }
  0x17   : > { %v209_v12 = vrot.slane %v208_v10, 2 }
  0x18   : > { %v217_v13 = vrot.slane %v216_v11, 2 }
  0x19   : > { %v210_v14 = vmax.f32 %v208_v10, %v209_v12 }
  0x1a   : > { %v218_v15 = vmax.f32 %v216_v11, %v217_v13 }
  0x1b   : > { %v211_v16 = vrot.slane %v210_v14, 1 }
  0x1c   : > { %v219_v17 = vrot.slane %v218_v15, 1 }
  0x1d   : > { %v212_v18 = vmax.f32 %v210_v14, %v211_v16 }
  0x1e   : > { %v220_v19 = vmax.f32 %v218_v15, %v219_v17 }
  0x1f   : > { %v221_v20 = vsub.f32 %v200_v0, %v212_v18  ;;  %v223_v21 = vsub.f32 %v202_v1, %v212_v18 }
  0x20   : > { %v222_v22 = vsub.f32 %v201_v2, %v220_v19  ;;  %v224_v23 = vsub.f32 %v203_v4, %v220_v19 }
  0x21   : > { %v225_v24 = vmul.f32 1.442695, %v221_v20  ;;  %v229_v25 = vmul.f32 1.442695, %v223_v21 }
  0x22   : > { %v227_v26 = vmul.f32 1.442695, %v222_v22  ;;  %v231_v27 = vmul.f32 1.442695, %v224_v23 }
  0x23   : > { %477 = vpow2.f32 %v225_v24 }
  0x24   : > { %479 = vpow2.f32 %v229_v25 }
  0x25   : > { %481 = vpow2.f32 %v227_v26 }
  0x26   : > { %483 = vpow2.f32 %v231_v27 }
  0x29   : > { %v478_v28 = vpop.eup %477 }
  0x2a   : > { %v480_v29 = vpop.eup %479 }
  0x2b   : > { %v482_v30 = vpop.eup %481  ;;  %v233_v31 = vsel %vm204_vm0, %v480_v29, 0.0 }
  0x2c   : > { %v484_v32 = vpop.eup %483  ;;  %v234_v33 = vadd.f32 %v478_v28, %v233_v31 }
  0x2d   : > { %v241_v34 = vsel %vm204_vm0, %v484_v32, 0.0 }
  0x2e   : > { %v235_v35 = vrot.slane %v234_v33, 4  ;;  %v242_v36 = vadd.f32 %v482_v30, %v241_v34 }
  0x30   : > { %v236_v37 = vadd.f32 %v235_v35, %v234_v33  ;;  %v243_v38 = vrot.slane %v242_v36, 4 }
  0x32   : > { %v237_v39 = vrot.slane %v236_v37, 2  ;;  %v244_v40 = vadd.f32 %v243_v38, %v242_v36 }
  0x34   : > { %v238_v41 = vadd.f32 %v237_v39, %v236_v37  ;;  %v245_v42 = vrot.slane %v244_v40, 2 }
  0x36   : > { %v239_v43 = vrot.slane %v238_v41, 1  ;;  %v246_v44 = vadd.f32 %v245_v42, %v244_v40 }
  0x38   : > { %v240_v45 = vadd.f32 %v239_v43, %v238_v41  ;;  %v247_v46 = vrot.slane %v246_v44, 1 }
  0x3a   : > { %485 = vrcp.f32 %v240_v45  ;;  %v248_v47 = vadd.f32 %v247_v46, %v246_v44  ;;  %v260_v50 = vand.u32 2147483648, %v240_v45  ;;  %vm254_vm1 = vweird.f32 %v240_v45 }
  0x3b   : > { %v258_v53 = vand.u32 2147483647, %v240_v45 }
  0x3c   : > { %487 = vrcp.f32 %v248_v47  ;;  %v261_v56 = vor.u32 1.1754944e-38, %v260_v50  ;;  %v275_v57 = vand.u32 2147483648, %v248_v47  ;;  %vm269_vm4 = vweird.f32 %v248_v47 }
  0x3d   : > { %v273_v59 = vand.u32 2147483647, %v248_v47  ;;  %vm259_vm6 = vcmp.eq.f32.partialorder %v258_v53, 8.507059e+37 }
  0x3e   : > { %v276_v63 = vor.u32 1.1754944e-38, %v275_v57 }
  0x3f   : > { %vm274_vm8 = vcmp.eq.f32.partialorder %v273_v59, 8.507059e+37 }
  0x40   : > { %v486_v48 = vpop.eup %485 }
  0x41   : > { %v250_v49 = vmul.f32 %v486_v48, %v240_v45  ;;  %vm255_vm2 = vweird.f32 %v486_v48 }
  0x42   : > { %v488_v51 = vpop.eup %487  ;;  %vm256_vm3 = vmor %vm254_vm1, %vm255_vm2 }
  0x43   : > { %v251_v52 = vsub.f32 1.0, %v250_v49  ;;  %v265_v54 = vmul.f32 %v488_v51, %v248_v47  ;;  %vm270_vm5 = vweird.f32 %v488_v51 }
  0x44   : > { %vm271_vm7 = vmor %vm269_vm4, %vm270_vm5 }
  0x45   : > { %v252_v55 = vmul.f32 %v486_v48, %v251_v52  ;;  %v266_v58 = vsub.f32 1.0, %v265_v54 }
  0x47   : > { %v253_v60 = vadd.f32 %v486_v48, %v252_v55  ;;  %v267_v61 = vmul.f32 %v488_v51, %v266_v58 }
  0x49   : > { %v257_v62 = vsel %vm256_vm3, %v486_v48, %v253_v60  ;;  %v268_v1 = vadd.f32 %v488_v51, %v267_v61 }
  0x4a   : > { %v262_v0 = vsel %vm259_vm6, %v261_v56, %v257_v62 }
  0x4b   : > { %v279_v2 = vmul.f32 %v480_v29, %v262_v0  ;;  %v263_v3 = vmul.f32 %v478_v28, %v262_v0  ;;  %v272_v4 = vsel %vm271_vm7, %v488_v51, %v268_v1 }
  0x4c   : > { %v277_v5 = vsel %vm274_vm8, %v276_v63, %v272_v4 }
  0x4d   : > { %445 = vmatpush.msk.msra.mxu0 %vm204_vm0, %v279_v2  ;;  %v280_v7 = vmul.f32 %v484_v32, %v277_v5  ;;  %v278_v8 = vmul.f32 %v482_v30, %v277_v5 }
  0x4f   : > { %307 = vmatpush.msra.mxu0 %v263_v3  ;;  %447 = vmatpush.msk.msra.mxu1 %vm204_vm0, %v280_v7 }
  0x50   : > { %446 = vmatmul.msk.f32.vlgmr.msra.gmra.mxu0 %vm282_vm9, %v281_v6 }
  0x51   : > { %327 = vmatpush.msra.mxu1 %v278_v8 }
  0x52   : > { %448 = vmatmul.msk.f32.vlgmr.msra.gmra.mxu1 %vm282_vm9, %v281_v6 }
  0xcd   : > { %v309_v9 = vpop.f32.mrf.mxu0 }
  0xce   : > { %v332_v10 = vmax.f32 %v309_v9, 0.0 }
  0xcf   : > { %v329_v11 = vpop.f32.mrf.mxu1 }
  0xd0   : > { %334 = vst [vmem:[%s198_s24] sm:$0xff] %v332_v10  ;;  %v333_v12 = vmax.f32 %v329_v11, 0.0 }
  0xd2   : > { %335 = vst [vmem:[%s198_s24 + $0x8] sm:$0xff] %v333_v12 }
  0xd3 PF: > { %s12_s11 = sadd.s32 1, %s511_s11   ;;  %s578_s9 = smov %s507_s10 }
  0xd4   : > { %p9_p5 = scmp.ge.s32.totalorder %s12_s11, 4   ;;  %s579_s10 = smov %s581_s12 }
  0xd6   :  { %11 = sbr.rel (!%p9_p5) target bundleno = 2 (0x2), region = 61 }

// kernel: gba_forward.2
= control target key start
LH: loop header
LB: loop body
LE: loop exit
PB: predicated region body
PF: predicated region fallthrough
CT: control target
= control target key end

     0   :  { %s1182_s30 = smov 0   ;;  %s1184_s10 = smov 0   ;;  %s1336_s0 = inlined_call_operand.vmem [shape: f32[2,4,256], index: 0, kind: input, shape index: {}]   ;;  %s1337_s1 = inlined_call_operand.vmem [shape: f32[10,4], index: 1, kind: input, shape index: {}]   ;;  %s1338_s2 = inlined_call_operand.vmem [shape: f32[32,4], index: 2, kind: input, shape index: {}]   ;;  %s1339_s3 = inlined_call_operand.vmem [shape: f32[10,10], index: 3, kind: input, shape index: {}]   ;;  %s1340_s4 = inlined_call_operand.vmem [shape: f32[32,32], index: 4, kind: input, shape index: {}]   ;;  %s1341_s5 = inlined_call_operand.vmem [shape: f32[32,32], index: 5, kind: input, shape index: {}]   ;;  %s1342_s6 = inlined_call_operand.vmem [shape: f32[32,32], index: 6, kind: input, shape index: {}]   ;;  %s1343_s7 = inlined_call_operand.vmem [shape: f32[8,32], index: 7, kind: input, shape index: {}]   ;;  %s1344_s8 = inlined_call_operand.vmem [shape: f32[2,10,256], index: 8, kind: output, shape index: {0}]   ;;  %s1345_s9 = inlined_call_operand.vmem [shape: f32[2,8,10], index: 9, kind: output, shape index: {1}]  }
   0x1   :  { %s1186_s11 = smov 0  }
   0x2 LB: > { %s32_s12 = sadd.s32 1, %s1125_s10  ;;  %p1022_p0 = scmp.ge.s32.totalorder %s1129_s11, 1  ;;  %s1129_s11 = sphi %s1186_s11, %s20_s11   ;;  %s1125_s10 = sphi %s1184_s10, %s1347_s10   ;;  %s1121_s30 = sphi %s1182_s30, %s1346_s30  }
   0x3   : > { %p34_p1 = scmp.ge.s32.totalorder %s32_s12, 2  ;;  %p311_p2 = scmp.lt.s32.totalorder %s1129_s11, 3 }
   0x5   : > { %s1349_s12 = smov (%p34_p1, %s32_s12), 0  ;;  %p312_p3 = pnand %p1022_p0, %p311_p2 }
   0x6   : > { %p360_p4 = scmp.lt.s32.totalorder (!%p312_p3), %s1121_s30, 1 }
   0x7   : > { %315 = sbr.rel (%p312_p3) target bundleno = 1315 (0x523), region = 52 }
   0xc   : > { %s1351_s30 = smov (!%p360_p4, %s1121_s30), 1  ;;  %vm397_vm0 = vcmask 1043456   ;;  %v384_v1 = vld [vmem:[%s1337_s1] sm:$0xff]  ;;  %vm390_vm1 = vcmask 31744   ;;  %v385_v4 = vld [vmem:[%s1337_s1 + $0x8] sm:$0x3] }
   0xd   : > { %s1064_s13 = sshll.u32 %s1351_s30, 3  ;;  %v448_v5 = vld [vmem:[%s1338_s2] sm:$0xff]  ;;  %v449_v8 = vld [vmem:[%s1338_s2 + $0x8] sm:$0xff]  ;;  %v450_v9 = vld [vmem:[%s1338_s2 + $0x10] sm:$0xff]  ;;  %s1065_s29 = sshll.u32 %s1351_s30, 5  ;;  %vm533_vm2 = vcmask 1041408  }
   0xe   : > { %s367_s16 = scalar_lea.vmem %s1336_s0, %s1064_s13  ;;  %v451_v10 = vld [vmem:[%s1338_s2 + $0x18] sm:$0xff]  ;;  %vm614_vm11 = vcmask 261120   ;;  %vm616_vm12 = vcmask 254976   ;;  %vm712_vm13 = vcmask 80896   ;;  %s382_s17 = scalar_lea.vmem %s1345_s9, %s1064_s13 }
   0xf   : > { %v383_v0 = vld [vmem:[%s367_s16] sm:$0xff]  ;;  %s377_s16 = scalar_lea.vmem %s1344_s8, %s1065_s29 }
  0x10   : > { %387 = vst [vmem:[#allocation1] ss:$2 sm:$0xff] %v383_v0 }
  0x17   : > { %v388_v2 = vld.sshfl [vmem:[#allocation1] sm:$0xff pattern:$0x75316420]  ;;  %v389_v3 = vld.sshfl [vmem:[#allocation1 + $0x8] sm:$0xff pattern:$0x75316420] }
  0x18   : > { %1028 = vmatpush.msk.msra.mxu0 %vm397_vm0, %v388_v2  ;;  %1031 = vmatpush.msk.msra.mxu1 %vm397_vm0, %v389_v3  ;;  %452 = vst [vmem:[#allocation1] ss:$2 sm:$0xff] %v383_v0 }
  0x19   : > { %1029 = vmatmul.msk.f32.vlgmr.msra.gmra.mxu0 %vm390_vm1, %v384_v1  ;;  %1032 = vmatmul.msk.f32.vlgmr.msra.gmra.mxu1 %vm390_vm1, %v384_v1 }
  0x1f   : > { %v453_v6 = vld.sshfl [vmem:[#allocation1] sm:$0xff pattern:$0x75316420]  ;;  %v454_v7 = vld.sshfl [vmem:[#allocation1 + $0x8] sm:$0xff pattern:$0x75316420] }
  0x20   : > { %1034 = vmatpush.msk.msra.mxu2 %vm397_vm0, %v453_v6  ;;  %1039 = vmatpush.msk.msra.mxu3 %vm397_vm0, %v454_v7 }
  0x21   : > { %1030 = vmatmul.msk.f32.gmra.mxu0 %vm390_vm1, %v385_v4  ;;  %1033 = vmatmul.msk.f32.gmra.mxu1 %vm390_vm1, %v385_v4 }
  0x22   : > { %1035 = vmatmul.msk.f32.vlgmr.msra.gmra.mxu2 %vm390_vm1, %v448_v5  ;;  %1040 = vmatmul.msk.f32.vlgmr.msra.gmra.mxu3 %vm390_vm1, %v448_v5 }
  0x2a   : > { %1036 = vmatmul.msk.f32.gmra.mxu2 %vm390_vm1, %v449_v8  ;;  %1041 = vmatmul.msk.f32.gmra.mxu3 %vm390_vm1, %v449_v8 }
  0x32   : > { %1037 = vmatmul.msk.f32.gmra.mxu2 %vm390_vm1, %v450_v9  ;;  %1042 = vmatmul.msk.f32.gmra.mxu3 %vm390_vm1, %v450_v9 }
  0x3a   : > { %1038 = vmatmul.msk.f32.gmra.mxu2 %vm390_vm1, %v451_v10  ;;  %1043 = vmatmul.msk.f32.gmra.mxu3 %vm390_vm1, %v451_v10 }
  0x96   : > { %v419_v11 = vpop.f32.mrf.mxu0  ;;  %v442_v12 = vpop.f32.mrf.mxu1 }
  0x97   : > { %529 = vst [vmem:[%s377_s16] sm:$0xff] %v419_v11 }
  0x98   : > { %530 = vst [vmem:[%s377_s16 + $0x8] sm:$0xff] %v442_v12 }
  0x9e   : > { %v422_v13 = vpop.f32.mrf.mxu0  ;;  %v445_v14 = vpop.f32.mrf.mxu1 }
  0x9f   : > { %531 = vst [vmem:[%s377_s16 + $0x10] sm:$0x3] %v422_v13  ;;  %v534_v15 = vsel %vm533_vm2, %v422_v13, -inf  ;;  %v542_v16 = vsel %vm533_vm2, %v445_v14, -inf }
  0xa0   : > { %v535_v17 = vmax.f32 %v419_v11, %v534_v15  ;;  %532 = vst [vmem:[%s377_s16 + $0x18] sm:$0x3] %v445_v14  ;;  %v543_v18 = vmax.f32 %v442_v12, %v542_v16 }
  0xa2   : > { %v536_v19 = vrot.slane %v535_v17, 4  ;;  %v544_v20 = vrot.slane %v543_v18, 4 }
  0xa4   : > { %v537_v21 = vmax.f32 %v535_v17, %v536_v19  ;;  %v545_v22 = vmax.f32 %v543_v18, %v544_v20 }
  0xa5   : > { %v488_v23 = vpop.f32.mrf.mxu2  ;;  %v517_v24 = vpop.f32.mrf.mxu3 }
  0xa6   : > { %v538_v25 = vrot.slane %v537_v21, 2  ;;  %v546_v26 = vrot.slane %v545_v22, 2 }
  0xa8   : > { %v539_v27 = vmax.f32 %v537_v21, %v538_v25  ;;  %v547_v28 = vmax.f32 %v545_v22, %v546_v26 }
  0xaa   : > { %v540_v29 = vrot.slane %v539_v27, 1  ;;  %v548_v30 = vrot.slane %v547_v28, 1 }
  0xac   : > { %v541_v31 = vmax.f32 %v539_v27, %v540_v29  ;;  %v549_v32 = vmax.f32 %v547_v28, %v548_v30  ;;  %v1131_v27 = vmov 0.0   ;;  %v682_v28 = vld [vmem:[%s1340_s4 + $0x18] sm:$0xff]  ;;  %v681_v29 = vld [vmem:[%s1340_s4 + $0x10] sm:$0xff]  ;;  %v680_v30 = vld [vmem:[%s1340_s4 + $0x8] sm:$0xff] }
  0xad   : > { %v491_v33 = vpop.f32.mrf.mxu2  ;;  %v520_v34 = vpop.f32.mrf.mxu3  ;;  %615 = vst.msk [vmem:[#allocation2] sm:$0xff] %vm614_vm11, %v1131_v27 }
  0xae   : > { %v550_v35 = vsub.f32 %v419_v11, %v541_v31  ;;  %v552_v36 = vsub.f32 %v422_v13, %v541_v31  ;;  %v551_v37 = vsub.f32 %v442_v12, %v549_v32  ;;  %v553_v38 = vsub.f32 %v445_v14, %v549_v32  ;;  %617 = vst.msk [vmem:[#allocation2 + $0x8] sm:$0x3] %vm616_vm12, %v1131_v27  ;;  %v679_v31 = vld [vmem:[%s1340_s4] sm:$0xff] }
  0xb0   : > { %v554_v39 = vmul.f32 1.442695, %v550_v35  ;;  %v558_v40 = vmul.f32 1.442695, %v552_v36  ;;  %v556_v41 = vmul.f32 1.442695, %v551_v37 }
  0xb1   : > { %v560_v42 = vmul.f32 1.442695, %v553_v38 }
  0xb2   : > { %1095 = vpow2.f32 %v554_v39 }
  0xb3   : > { %1097 = vpow2.f32 %v558_v40 }
  0xb4   : > { %1099 = vpow2.f32 %v556_v41 }
  0xb5   : > { %1101 = vpow2.f32 %v560_v42  ;;  %v494_v43 = vpop.f32.mrf.mxu2  ;;  %v523_v44 = vpop.f32.mrf.mxu3  ;;  %v619_v38 = vld [vmem:[#allocation2 + $0x8] sm:$0x3] }
  0xb8   : > { %v1096_v45 = vpop.eup %1095 }
  0xb9   : > { %v1098_v46 = vpop.eup %1097 }
  0xba   : > { %v1244_v47 = vpop.eup %1099  ;;  %v562_v48 = vsel %vm533_vm2, %v1098_v46, 0.0 }
  0xbb   : > { %v1247_v49 = vpop.eup %1101  ;;  %v563_v50 = vadd.f32 %v1096_v45, %v562_v48  ;;  %v675_v48 = vld [vmem:[%s1339_s3] sm:$0xff] }
  0xbc   : > { %v570_v51 = vsel %vm533_vm2, %v1247_v49, 0.0 }
  0xbd   : > { %v564_v52 = vrot.slane %v563_v50, 4  ;;  %v571_v53 = vadd.f32 %v1244_v47, %v570_v51  ;;  %v497_v54 = vpop.f32.mrf.mxu2  ;;  %v526_v55 = vpop.f32.mrf.mxu3  ;;  %v747_v51 = vld [vmem:[%s1341_s5] sm:$0xff] }
  0xbe   : > { %632 = vmatpush.xpose.msrb.mxu0 %v497_v54  ;;  %1066 = vmatpush.xpose.msrb.mxu3 %v497_v54 }
  0xbf   : > { %v565_v56 = vadd.f32 %v564_v52, %v563_v50  ;;  %v572_v57 = vrot.slane %v571_v53, 4  ;;  %655 = vmatpush.xpose.msrb.mxu1 %v526_v55  ;;  %v748_v50 = vld [vmem:[%s1341_s5 + $0x8] sm:$0xff] }
  0xc1   : > { %v566_v58 = vrot.slane %v565_v56, 2  ;;  %v573_v59 = vadd.f32 %v572_v57, %v571_v53  ;;  %v810_v57 = vld [vmem:[%s1342_s6 + $0x10] sm:$0xff] }
  0xc2   : > { %633 = vmatpush.xpose.msrb.mxu0 %v494_v43  ;;  %1067 = vmatpush.xpose.msrb.mxu3 %v494_v43 }
  0xc3   : > { %v567_v60 = vadd.f32 %v566_v58, %v565_v56  ;;  %v574_v61 = vrot.slane %v573_v59, 2  ;;  %656 = vmatpush.xpose.msrb.mxu1 %v523_v44  ;;  %v750_v44 = vld [vmem:[%s1341_s5 + $0x18] sm:$0xff] }
  0xc4   : > { %769 = vmatpush.msrb.mxu2 %v750_v44  ;;  %v811_v56 = vld [vmem:[%s1342_s6 + $0x18] sm:$0xff] }
  0xc5   : > { %v568_v62 = vrot.slane %v567_v60, 1  ;;  %v575_v63 = vadd.f32 %v574_v61, %v573_v59  ;;  %v808_v61 = vld [vmem:[%s1342_s6] sm:$0xff] }
  0xc6   : > { %634 = vmatpush.xpose.msrb.mxu0 %v491_v33  ;;  %1068 = vmatpush.xpose.msrb.mxu3 %v491_v33  ;;  %v618_v33 = vld [vmem:[#allocation2] sm:$0xff] }
  0xc7   : > { %v569_v0 = vadd.f32 %v568_v62, %v567_v60  ;;  %v576_v1 = vrot.slane %v575_v63, 1  ;;  %657 = vmatpush.xpose.msrb.mxu1 %v520_v34  ;;  %v809_v60 = vld [vmem:[%s1342_s6 + $0x8] sm:$0xff] }
  0xc9   : > { %1103 = vrcp.f32 %v569_v0  ;;  %v577_v2 = vadd.f32 %v576_v1, %v575_v63  ;;  %v589_v8 = vand.u32 2147483648, %v569_v0  ;;  %v587_v10 = vand.u32 2147483647, %v569_v0 }
  0xca   : > { %635 = vmatpush.xpose.msrb.mxu0 %v488_v23  ;;  %1069 = vmatpush.xpose.msrb.mxu3 %v488_v23  ;;  %vm583_vm4 = vweird.f32 %v569_v0 }
  0xcb   : > { %1105 = vrcp.f32 %v577_v2  ;;  %658 = vmatpush.xpose.msrb.mxu1 %v517_v24  ;;  %v604_v12 = vand.u32 2147483648, %v577_v2  ;;  %v602_v15 = vand.u32 2147483647, %v577_v2  ;;  %v590_v16 = vor.u32 1.1754944e-38, %v589_v8  ;;  %v869_v8 = vld [vmem:[%s1343_s7] sm:$0xff] }
  0xcc   : > { %vm588_vm7 = vcmp.eq.f32.partialorder %v587_v10, 8.507059e+37  ;;  %vm598_vm8 = vweird.f32 %v577_v2 }
  0xcd   : > { %v605_v20 = vor.u32 1.1754944e-38, %v604_v12  ;;  %vm603_vm10 = vcmp.eq.f32.partialorder %v602_v15, 8.507059e+37 }
  0xce   : > { %701 = vmatpush.msra.mxu0 %v682_v28 }
  0xcf   : > { %v1104_v3 = vpop.eup %1103 }
  0xd0   : > { %v579_v4 = vmul.f32 %v1104_v3, %v569_v0  ;;  %vm584_vm3 = vweird.f32 %v1104_v3  ;;  %702 = vmatpush.msra.mxu0 %v681_v29 }
  0xd1   : > { %v1106_v5 = vpop.eup %1105  ;;  %vm585_vm6 = vmor %vm583_vm4, %vm584_vm3 }
  0xd2   : > { %v580_v6 = vsub.f32 1.0, %v579_v4  ;;  %v594_v7 = vmul.f32 %v1106_v5, %v577_v2  ;;  %vm599_vm5 = vweird.f32 %v1106_v5  ;;  %703 = vmatpush.msra.mxu0 %v680_v30 }
  0xd3   : > { %vm600_vm9 = vmor %vm598_vm8, %vm599_vm5 }
  0xd4   : > { %v581_v9 = vmul.f32 %v1104_v3, %v580_v6  ;;  %v595_v11 = vsub.f32 1.0, %v594_v7  ;;  %704 = vmatpush.msra.mxu0 %v679_v31 }
  0xd6   : > { %v582_v13 = vadd.f32 %v1104_v3, %v581_v9  ;;  %v596_v14 = vmul.f32 %v1106_v5, %v595_v11 }
  0xd8   : > { %v586_v17 = vsel %vm585_vm6, %v1104_v3, %v582_v13  ;;  %v597_v18 = vadd.f32 %v1106_v5, %v596_v14 }
  0xd9   : > { %v591_v19 = vsel %vm588_vm7, %v590_v16, %v586_v17 }
  0xda   : > { %v592_v21 = vmul.f32 %v1096_v45, %v591_v19  ;;  %v608_v22 = vmul.f32 %v1098_v46, %v591_v19  ;;  %v601_v23 = vsel %vm600_vm9, %v1106_v5, %v597_v18  ;;  %v749_v45 = vld [vmem:[%s1341_s5 + $0x10] sm:$0xff] }
  0xdb   : > { %v606_v24 = vsel %vm603_vm10, %v605_v20, %v601_v23  ;;  %770 = vmatpush.msrb.mxu2 %v749_v45 }
  0xdc   : > { %636 = vmatmul.f32.vlgmr.msrb.gmra.mxu0 %v592_v21  ;;  %639 = vmatmul.f32.vlgmr.msrb.gmra.mxu3 %v608_v22  ;;  %v607_v25 = vmul.f32 %v1244_v47, %v606_v24  ;;  %v609_v26 = vmul.f32 %v1247_v49, %v606_v24  ;;  %v676_v49 = vld [vmem:[%s1339_s3 + $0x8] sm:$0x3] }
  0xdd   : > { %771 = vmatpush.msrb.mxu2 %v748_v50  ;;  %830 = vmatpush.msrb.mxu0 %v811_v56 }
  0xde   : > { %659 = vmatmul.f32.vlgmr.msrb.gmra.mxu1 %v607_v25 }
  0xdf   : > { %772 = vmatpush.msrb.mxu2 %v747_v51  ;;  %831 = vmatpush.msrb.mxu0 %v810_v57 }
  0xe1   : > { %832 = vmatpush.msrb.mxu0 %v809_v60 }
  0xe3   : > { %833 = vmatpush.msrb.mxu0 %v808_v61 }
  0xe6   : > { %662 = vmatmul.f32.gmra.mxu1 %v609_v26 }
 0x159   : > { %v637_v32 = vpop.f32.mrf.mxu0 }
 0x15b   : > { %v660_v34 = vpop.f32.mrf.mxu1 }
 0x15c   : > { %v661_v35 = vadd.f32 %v660_v34, %v637_v32 }
 0x15e   : > { %v666_v36 = vadd.f32 %v661_v35, %v618_v33 }
 0x15f   : > { %v640_v37 = vpop.f32.mrf.mxu3 }
 0x160   : > { %669 = vst.msk [vmem:[#allocation2] sm:$0xff] %vm614_vm11, %v666_v36 }
 0x163   : > { %v663_v39 = vpop.f32.mrf.mxu1 }
 0x164   : > { %v664_v40 = vadd.f32 %v663_v39, %v640_v37 }
 0x166   : > { %v667_v41 = vadd.f32 %v664_v40, %v619_v38 }
 0x167   : > { %v677_v42 = vld [vmem:[#allocation2] sm:$0xff] }
 0x168   : > { %671 = vst.msk [vmem:[#allocation2 + $0x8] sm:$0x3] %vm616_vm12, %v667_v41  ;;  %1044 = vmatmul.msk.f32.vlgmr.msra.gmra.mxu0 %vm614_vm11, %v677_v42 }
 0x16f   : > { %v678_v43 = vld [vmem:[#allocation2 + $0x8] sm:$0x3] }
 0x170   : > { %1045 = vmatmul.msk.f32.gmra.mxu0 %vm614_vm11, %v678_v43 }
 0x1e5   : > { %v706_v46 = vpop.f32.mrf.mxu0 }
 0x1ed   : > { %v709_v47 = vpop.f32.mrf.mxu0 }
 0x1ee   : > { %1046 = vmatpush.msk.msra.mxu1 %vm533_vm2, %v709_v47 }
 0x1f0   : > { %737 = vmatpush.msra.mxu1 %v706_v46 }
 0x1f1   : > { %1047 = vmatmul.msk.f32.vlgmr.msra.gmra.mxu1 %vm712_vm13, %v675_v48 }
 0x1f9   : > { %1048 = vmatmul.msk.f32.gmra.mxu1 %vm712_vm13, %v676_v49 }
 0x26e   : > { %v739_v52 = vpop.f32.mrf.mxu1 }
 0x26f   : > { %v745_v53 = vmax.f32 %v739_v52, 0.0 }
 0x271   : > { %1049 = vmatmul.msk.f32.vlgmr.msrb.gmra.mxu2 %vm614_vm11, %v745_v53 }
 0x276   : > { %v742_v54 = vpop.f32.mrf.mxu1 }
 0x277   : > { %v746_v55 = vmax.f32 %v742_v54, 0.0 }
 0x279   : > { %1050 = vmatmul.msk.f32.gmra.mxu2 %vm614_vm11, %v746_v55 }
 0x2f4   : > { %v774_v58 = vpop.f32.mrf.mxu2 }
 0x2fc   : > { %v777_v59 = vpop.f32.mrf.mxu2 }
 0x2fd   : > { %1051 = vmatpush.msk.msra.mxu3 %vm533_vm2, %v777_v59 }
 0x2ff   : > { %798 = vmatpush.msra.mxu3 %v774_v58 }
 0x300   : > { %1052 = vmatmul.msk.f32.vlgmr.msra.gmra.mxu3 %vm712_vm13, %v675_v48 }
 0x308   : > { %1053 = vmatmul.msk.f32.gmra.mxu3 %vm712_vm13, %v676_v49 }
 0x383   : > { %v800_v62 = vpop.f32.mrf.mxu3 }
 0x384   : > { %v806_v63 = vmax.f32 %v800_v62, 0.0 }
 0x386   : > { %1054 = vmatmul.msk.f32.vlgmr.msrb.gmra.mxu0 %vm614_vm11, %v806_v63 }
 0x38b   : > { %v803_v0 = vpop.f32.mrf.mxu3 }
 0x38c   : > { %v807_v1 = vmax.f32 %v803_v0, 0.0 }
 0x38e   : > { %1055 = vmatmul.msk.f32.gmra.mxu0 %vm614_vm11, %v807_v1 }
 0x403   : > { %v835_v2 = vpop.f32.mrf.mxu0 }
 0x40b   : > { %v838_v3 = vpop.f32.mrf.mxu0 }
 0x40c   : > { %1056 = vmatpush.msk.msrb.mxu1 %vm533_vm2, %v838_v3 }
 0x40e   : > { %859 = vmatpush.msrb.mxu1 %v835_v2 }
 0x40f   : > { %1057 = vmatmul.msk.f32.vlgmr.msrb.gmra.mxu1 %vm712_vm13, %v675_v48 }
 0x417   : > { %1058 = vmatmul.msk.f32.gmra.mxu1 %vm712_vm13, %v676_v49 }
 0x48c   : > { %v861_v4 = vpop.f32.mrf.mxu1 }
 0x48d   : > { %v867_v7 = vmax.f32 %v861_v4, 0.0 }
 0x494   : > { %v864_v5 = vpop.f32.mrf.mxu1 }
 0x495   : > { %v868_v6 = vmax.f32 %v864_v5, 0.0 }
 0x497   : > { %1059 = vmatpush.xpose.msk.msra.mxu2 %vm614_vm11, %v868_v6 }
 0x49b   : > { %1060 = vmatpush.xpose.msk.msra.mxu2 %vm614_vm11, %v867_v7 }
 0x49e   : > { %1061 = vmatmul.msk.f32.vlgmr.msra.gmra.mxu2 %vm614_vm11, %v869_v8 }
 0x521   : > { %v896_v9 = vpop.f32.mrf.mxu2 }
 0x522   : > { %899 = vst.msk [vmem:[%s382_s17] sm:$0xff] %vm712_vm13, %v896_v9 }
 0x523 PF: > { %s20_s11 = sadd.s32 1, %s1129_s11   ;;  %s1346_s30 = smov %s1125_s10 }
 0x524   : > { %p17_p5 = scmp.ge.s32.totalorder %s20_s11, 4   ;;  %s1347_s10 = smov %s1349_s12 }
 0x526   :  { %19 = sbr.rel (!%p17_p5) target bundleno = 2 (0x2), region = 102 }

</bundles_post_ra>
